<compile_context>
chip_gen: v5e
topology: v5e:2x2
jax: 0.10.0
libtpu: 0.0.40
codegen_flags: <defaults>
</compile_context>

<pallas_src>
import functools

import jax
import jax.numpy as jnp
import numpy as np
from jax import lax
from jax.experimental import pallas as pl
from jax.experimental.pallas import tpu as pltpu

EPS = 1e-5          # nn.BatchNorm1d default eps
NEG_SLOPE = 0.01    # nn.LeakyReLU default negative_slope
HIGH = lax.Precision.HIGHEST


def _sigmoid(x):
    # Explicit form so the kernel and the reference use identical math.
    return 1.0 / (1.0 + jnp.exp(-x))


# ----------------------------------------------------------------------------
# Shared weight folding (exact, activation-free)
# ----------------------------------------------------------------------------
def fold_lstm_weights(p):
    """Stack gates (i,f,g,o) along lanes and fold spatial_embedding into them."""
    E = p["w_emb"].shape[1]
    H = p["w_hh"].shape[-1]
    w_ih_s = jnp.transpose(p["w_ih"], (1, 0, 2)).reshape(E, 4 * H)   # (E, 4H)
    w_hh_s = jnp.transpose(p["w_hh"], (1, 0, 2)).reshape(H, 4 * H)   # (H, 4H)
    b_s = p["b_lstm"].reshape(1, 4 * H)                              # (1, 4H)
    w_x = jnp.dot(p["w_emb"], w_ih_s, precision=HIGH)                # (2, 4H)
    b_f = jnp.dot(p["b_emb"], w_ih_s, precision=HIGH) + b_s          # (1, 4H)
    return w_x, b_f, w_hh_s


# ----------------------------------------------------------------------------
# Pallas kernel
# ----------------------------------------------------------------------------
def discriminator_kernel(x2d_ref,      # (T*B, 2)   traj_rel flattened
                         w_big_ref,    # (2H, 4H)   [w_hh ; w1 zero-padded]
                         slab_ref,     # (8, 4H)    packed small params
                         scores_ref,   # (B, 1)     output
                         *, seq_len, batch, h_dim):
    B, H = batch, h_dim
    L = 4 * H

    slab = slab_ref[...]                        # one (8,128) vreg
    b_f  = slab[0:1, :]
    wx0  = slab[1:2, :]
    wx1  = slab[2:3, :]
    b1   = slab[3:4, :]
    g1   = slab[4:5, :]
    be1  = slab[5:6, :]
    w2   = slab[6:7, :]
    b2   = slab[7:8, 0:1]
    g2   = slab[7:8, 1:2]
    be2  = slab[7:8, 2:3]

    wb = w_big_ref[...]                          # (2H, L)
    w_hh_bf = wb[0:H, :].astype(jnp.bfloat16)    # single-pass MXU operand
    w1_bf   = wb[H:2 * H, :].astype(jnp.bfloat16)

    # Input-side gate pre-activations for ALL timesteps at once (off the serial
    # chain): two broadcasted outer products + fused bias (K=2, so no MXU).
    x2d = x2d_ref[...]                                        # (T*B, 2)
    x_all = x2d[:, 0:1] * wx0 + x2d[:, 1:2] * wx1 + b_f       # (T*B, L)

    # Lane mask for the tanh gate block [2H, 3H) -- hoisted above the loop.
    lane = lax.broadcasted_iota(jnp.int32, (B, L), 1)
    g_mask = (lane >= 2 * H) & (lane < 3 * H)

    def act_split(gates):
        sg = _sigmoid(gates)                     # full-vreg EUP pass
        th = jnp.tanh(gates)                     # full-vreg EUP pass
        a = jnp.where(g_mask, th, sg)            # cheap VPU select
        return a[:, 0:H], a[:, H:2 * H], a[:, 2 * H:3 * H], a[:, 3 * H:4 * H]

    # t = 0 peeled: h = c = 0  =>  gates = x_all[0:B]  (no matmul).
    i, f, g, o = act_split(x_all[0:B, :])
    c = i * g
    h = o * jnp.tanh(c)

    # Remaining steps, fully unrolled; h/c live in vregs.
    for t in range(1, seq_len):
        gates = x_all[t * B:(t + 1) * B, :] + jnp.dot(
            h.astype(jnp.bfloat16), w_hh_bf, preferred_element_type=jnp.float32)
        i, f, g, o = act_split(gates)
        c = f * c + i * g
        h = o * jnp.tanh(c)

    # real_classifier layer 1: Linear(H, M) -> BatchNorm1d(M) -> LeakyReLU.
    # Padded lanes (>= M) have zero weights / gamma / beta and stay exactly 0.
    z1 = jnp.dot(h.astype(jnp.bfloat16), w1_bf,
                 preferred_element_type=jnp.float32) + b1
    m1 = jnp.mean(z1, axis=0, keepdims=True)
    v1 = jnp.mean((z1 - m1) ** 2, axis=0, keepdims=True)
    y1 = g1 * (z1 - m1) * lax.rsqrt(v1 + EPS) + be1
    y1 = jnp.where(y1 >= 0, y1, NEG_SLOPE * y1)

    # real_classifier layer 2: Linear(M, 1) -> BatchNorm1d(1) -> LeakyReLU.
    z2 = jnp.sum(y1 * w2, axis=1, keepdims=True) + b2          # (B, 1)
    m2 = jnp.mean(z2, axis=0, keepdims=True)
    v2 = jnp.mean((z2 - m2) ** 2, axis=0, keepdims=True)
    y2 = g2 * (z2 - m2) * lax.rsqrt(v2 + EPS) + be2
    scores_ref[...] = jnp.where(y2 >= 0, y2, NEG_SLOPE * y2)


# ----------------------------------------------------------------------------
# Wrapper: pack weights into lane-dense slabs (once) and launch
# ----------------------------------------------------------------------------
def trajectory_discriminator(traj, traj_rel, params, *, seq_len, batch, h_dim, mlp_dim):
    del traj  # unused for d_type='local' (kept for API parity with the PyTorch module)
    H, M = h_dim, mlp_dim
    L = 4 * H
    assert L % 128 == 0, "4*h_dim must be lane-dense (multiple of 128)"
    assert M <= L and L >= 3, "packing assumes mlp_dim <= 4*h_dim"

    w_x, b_f, w_hh_s = fold_lstm_weights(params)

    # Big weight slab: w_hh on top, w1 zero-padded to L lanes below.
    w1_pad = jnp.pad(params["w1"], ((0, 0), (0, L - M)))             # (H, L)
    w_big = jnp.concatenate([w_hh_s, w1_pad], axis=0)                # (2H, L)

    # Small-parameter slab: 8 rows x L lanes == one (8,128) vreg at L=128.
    def row(v):
        return jnp.pad(v, ((0, 0), (0, L - v.shape[1])))

    scal = jnp.concatenate([params["b2"], params["g2"], params["be2"]], axis=1)  # (1,3)
    p_slab = jnp.concatenate(
        [b_f,                     # row 0: folded-emb fused bias (1, L)
         w_x,                     # rows 1-2: folded-emb input weights (2, L)
         row(params["b1"]),       # row 3
         row(params["g1"]),       # row 4
         row(params["be1"]),      # row 5
         row(params["w2"]),       # row 6
         row(scal)],              # row 7: [b2, g2, be2, 0...]
        axis=0)                                                      # (8, L)

    x2d = traj_rel.reshape(seq_len * batch, 2)

    kernel = functools.partial(discriminator_kernel,
                               seq_len=seq_len, batch=batch, h_dim=h_dim)
    vmem = pl.BlockSpec(memory_space=pltpu.MemorySpace.VMEM)
    return pl.pallas_call(
        kernel,
        out_shape=jax.ShapeDtypeStruct((batch, 1), jnp.float32),
        in_specs=[vmem, vmem, vmem],
        out_specs=vmem,
    )(x2d, w_big, p_slab)


# ----------------------------------------------------------------------------
# Pure-JAX reference.  Mirrors PyTorch semantics; matmul operands are cast to
# bf16 (f32 accumulate) to match the kernel's MXU-native single-pass precision,
# and the exact (activation-free) embedding fold is reused so the comparison
# stays tight.
# ----------------------------------------------------------------------------
def reference_forward(traj_rel, p):
    T, B, _ = traj_rel.shape
    H = p["w_hh"].shape[-1]
    w_x, b_f, w_hh_s = fold_lstm_weights(p)
    x2d = traj_rel.reshape(T * B, 2)
    x_all = x2d[:, 0:1] * w_x[0:1, :] + x2d[:, 1:2] * w_x[1:2, :] + b_f
    w_hh_bf = w_hh_s.astype(jnp.bfloat16)

    h = jnp.zeros((B, H), jnp.float32)
    c = jnp.zeros((B, H), jnp.float32)
    for t in range(T):
        gates = x_all[t * B:(t + 1) * B, :] + jnp.dot(
            h.astype(jnp.bfloat16), w_hh_bf, preferred_element_type=jnp.float32)
        i = _sigmoid(gates[:, 0 * H:1 * H])
        f = _sigmoid(gates[:, 1 * H:2 * H])
        g = jnp.tanh(gates[:, 2 * H:3 * H])
        o = _sigmoid(gates[:, 3 * H:4 * H])
        c = f * c + i * g
        h = o * jnp.tanh(c)

    def bn_lrelu(z, gamma, beta):
        m = jnp.mean(z, axis=0, keepdims=True)
        v = jnp.mean((z - m) ** 2, axis=0, keepdims=True)
        y = gamma * (z - m) * lax.rsqrt(v + EPS) + beta
        return jnp.where(y >= 0, y, NEG_SLOPE * y)

    z1 = jnp.dot(h.astype(jnp.bfloat16), p["w1"].astype(jnp.bfloat16),
                 preferred_element_type=jnp.float32) + p["b1"]
    y1 = bn_lrelu(z1, p["g1"], p["be1"])
    z2 = jnp.sum(y1 * p["w2"], axis=1, keepdims=True) + p["b2"]
    return bn_lrelu(z2, p["g2"], p["be2"])


# ----------------------------------------------------------------------------
# Deterministic parameter construction (synthetic weights; no checkpoint)
# ----------------------------------------------------------------------------
def make_params(key, e_dim, h_dim, mlp_dim):
    ks = jax.random.split(key, 10)
    u = lambda k, shape, s: jax.random.uniform(k, shape, jnp.float32, -s, s)
    return {
        # spatial_embedding: Linear(2, E)
        "w_emb": u(ks[0], (2, e_dim), 1.0 / np.sqrt(2)),
        "b_emb": u(ks[1], (1, e_dim), 1.0 / np.sqrt(2)),
        # LSTM(E, H): stacked gates (i, f, g, o), pre-transposed to (in, H)
        "w_ih": u(ks[2], (4, e_dim, h_dim), 1.0 / np.sqrt(h_dim)),
        "w_hh": u(ks[3], (4, h_dim, h_dim), 1.0 / np.sqrt(h_dim)),
        "b_lstm": u(ks[4], (4, 1, h_dim), 2.0 / np.sqrt(h_dim)),  # b_ih + b_hh
        # real_classifier: Linear(H,M) -> BN(M) -> LeakyReLU -> Linear(M,1) -> BN(1) -> LeakyReLU
        "w1": u(ks[5], (h_dim, mlp_dim), 1.0 / np.sqrt(h_dim)),
        "b1": u(ks[6], (1, mlp_dim), 1.0 / np.sqrt(h_dim)),
        "g1": jnp.ones((1, mlp_dim), jnp.float32),
        "be1": jnp.zeros((1, mlp_dim), jnp.float32),
        "w2": u(ks[7], (1, mlp_dim), 1.0 / np.sqrt(mlp_dim)),
        "b2": u(ks[8], (1, 1), 1.0 / np.sqrt(mlp_dim)),
        "g2": jnp.ones((1, 1), jnp.float32),
        "be2": jnp.zeros((1, 1), jnp.float32),
    }


if __name__ == "__main__":
    obs_len, pred_len = 4, 4
    seq_len = obs_len + pred_len          # 8
    batch = 8
    e_dim, h_dim, mlp_dim = 32, 32, 64    # 4*h_dim = 128 fills the lane width

    key = jax.random.PRNGKey(0)
    k_traj, k_rel, k_par = jax.random.split(key, 3)
    traj = jax.random.normal(k_traj, (seq_len, batch, 2), jnp.float32)
    traj_rel = 0.5 * jax.random.normal(k_rel, (seq_len, batch, 2), jnp.float32)
    params = make_params(k_par, e_dim, h_dim, mlp_dim)

    run = jax.jit(functools.partial(trajectory_discriminator, seq_len=seq_len,
                                    batch=batch, h_dim=h_dim, mlp_dim=mlp_dim))
    scores = jax.block_until_ready(run(traj, traj_rel, params))

    ref = jax.block_until_ready(reference_forward(traj_rel, params))
    np.testing.assert_allclose(np.asarray(scores), np.asarray(ref),
                               rtol=2e-3, atol=2e-3)

    print("KERNEL_OK")
</pallas_src>

<mosaic_0001>
module attributes {stable_mosaic.version = 11 : i64} {
  func.func @discriminator_kernel(%arg0: memref<64x2xf32, #tpu.memory_space<vmem>>, %arg1: memref<64x128xf32, #tpu.memory_space<vmem>>, %arg2: memref<8x128xf32, #tpu.memory_space<vmem>>, %arg3: memref<8x1xf32, #tpu.memory_space<vmem>>) attributes {dimension_semantics = [], scalar_prefetch = 0 : i64, scratch_operands = 0 : i64, tpu.core_type = #tpu.core_type<tc>} {
    %c0 = arith.constant 0 : index
    %c0_0 = arith.constant 0 : index
    %0 = vector.load %arg2[%c0, %c0_0] : memref<8x128xf32, #tpu.memory_space<vmem>>, vector<8x128xf32>
    %1 = vector.extract_strided_slice %0 {offsets = [0, 0], sizes = [1, 128], strides = [1, 1]} : vector<8x128xf32> to vector<1x128xf32>
    %2 = vector.extract_strided_slice %0 {offsets = [1, 0], sizes = [1, 128], strides = [1, 1]} : vector<8x128xf32> to vector<1x128xf32>
    %3 = vector.extract_strided_slice %0 {offsets = [2, 0], sizes = [1, 128], strides = [1, 1]} : vector<8x128xf32> to vector<1x128xf32>
    %4 = vector.extract_strided_slice %0 {offsets = [3, 0], sizes = [1, 128], strides = [1, 1]} : vector<8x128xf32> to vector<1x128xf32>
    %5 = vector.extract_strided_slice %0 {offsets = [4, 0], sizes = [1, 128], strides = [1, 1]} : vector<8x128xf32> to vector<1x128xf32>
    %6 = vector.extract_strided_slice %0 {offsets = [5, 0], sizes = [1, 128], strides = [1, 1]} : vector<8x128xf32> to vector<1x128xf32>
    %7 = vector.extract_strided_slice %0 {offsets = [6, 0], sizes = [1, 128], strides = [1, 1]} : vector<8x128xf32> to vector<1x128xf32>
    %8 = vector.extract_strided_slice %0 {offsets = [7, 0], sizes = [1, 1], strides = [1, 1]} : vector<8x128xf32> to vector<1x1xf32>
    %9 = vector.extract_strided_slice %0 {offsets = [7, 1], sizes = [1, 1], strides = [1, 1]} : vector<8x128xf32> to vector<1x1xf32>
    %10 = vector.extract_strided_slice %0 {offsets = [7, 2], sizes = [1, 1], strides = [1, 1]} : vector<8x128xf32> to vector<1x1xf32>
    %c0_1 = arith.constant 0 : index
    %c0_2 = arith.constant 0 : index
    %11 = vector.load %arg1[%c0_1, %c0_2] : memref<64x128xf32, #tpu.memory_space<vmem>>, vector<64x128xf32>
    %12 = vector.extract_strided_slice %11 {offsets = [0, 0], sizes = [32, 128], strides = [1, 1]} : vector<64x128xf32> to vector<32x128xf32>
    %13 = arith.truncf %12 : vector<32x128xf32> to vector<32x128xbf16>
    %14 = vector.extract_strided_slice %11 {offsets = [32, 0], sizes = [32, 128], strides = [1, 1]} : vector<64x128xf32> to vector<32x128xf32>
    %15 = arith.truncf %14 : vector<32x128xf32> to vector<32x128xbf16>
    %c0_3 = arith.constant 0 : index
    %c0_4 = arith.constant 0 : index
    %16 = vector.load %arg0[%c0_3, %c0_4] : memref<64x2xf32, #tpu.memory_space<vmem>>, vector<64x2xf32>
    %17 = vector.extract_strided_slice %16 {offsets = [0, 0], sizes = [64, 1], strides = [1, 1]} : vector<64x2xf32> to vector<64x1xf32>
    %18 = vector.broadcast %17 : vector<64x1xf32> to vector<64x128xf32>
    %19 = vector.broadcast %2 : vector<1x128xf32> to vector<64x128xf32>
    %20 = arith.mulf %18, %19 : vector<64x128xf32>
    %21 = vector.extract_strided_slice %16 {offsets = [0, 1], sizes = [64, 1], strides = [1, 1]} : vector<64x2xf32> to vector<64x1xf32>
    %22 = vector.broadcast %21 : vector<64x1xf32> to vector<64x128xf32>
    %23 = vector.broadcast %3 : vector<1x128xf32> to vector<64x128xf32>
    %24 = arith.mulf %22, %23 : vector<64x128xf32>
    %25 = arith.addf %20, %24 : vector<64x128xf32>
    %26 = vector.broadcast %1 : vector<1x128xf32> to vector<64x128xf32>
    %27 = arith.addf %25, %26 : vector<64x128xf32>
    %28 = tpu.iota {dimensions = array<i32: 1>} : vector<8x128xi32>
    %c64_i32 = arith.constant 64 : i32
    %29 = vector.broadcast %c64_i32 : i32 to vector<8x128xi32>
    %30 = arith.cmpi sge, %28, %29 : vector<8x128xi32>
    %c96_i32 = arith.constant 96 : i32
    %31 = vector.broadcast %c96_i32 : i32 to vector<8x128xi32>
    %32 = arith.cmpi slt, %28, %31 : vector<8x128xi32>
    %33 = arith.andi %30, %32 : vector<8x128xi1>
    %34 = vector.extract_strided_slice %27 {offsets = [0, 0], sizes = [8, 128], strides = [1, 1]} : vector<64x128xf32> to vector<8x128xf32>
    %cst = arith.constant 0.000000e+00 : f32
    %35 = vector.broadcast %cst : f32 to vector<8x128xf32>
    %36 = arith.subf %35, %34 : vector<8x128xf32>
    %37 = math.exp %36 : vector<8x128xf32>
    %cst_5 = arith.constant 1.000000e+00 : f32
    %38 = vector.broadcast %cst_5 : f32 to vector<8x128xf32>
    %39 = arith.addf %38, %37 : vector<8x128xf32>
    %cst_6 = arith.constant 1.000000e+00 : f32
    %40 = vector.broadcast %cst_6 : f32 to vector<8x128xf32>
    %41 = arith.divf %40, %39 : vector<8x128xf32>
    %42 = math.tanh %34 : vector<8x128xf32>
    %43 = arith.select %33, %42, %41 : vector<8x128xi1>, vector<8x128xf32>
    %44 = vector.extract_strided_slice %43 {offsets = [0, 0], sizes = [8, 32], strides = [1, 1]} : vector<8x128xf32> to vector<8x32xf32>
    %45 = vector.extract_strided_slice %43 {offsets = [0, 64], sizes = [8, 32], strides = [1, 1]} : vector<8x128xf32> to vector<8x32xf32>
    %46 = vector.extract_strided_slice %43 {offsets = [0, 96], sizes = [8, 32], strides = [1, 1]} : vector<8x128xf32> to vector<8x32xf32>
    %47 = arith.mulf %44, %45 : vector<8x32xf32>
    %48 = math.tanh %47 : vector<8x32xf32>
    %49 = arith.mulf %46, %48 : vector<8x32xf32>
    %50 = vector.extract_strided_slice %27 {offsets = [8, 0], sizes = [8, 128], strides = [1, 1]} : vector<64x128xf32> to vector<8x128xf32>
    %51 = arith.truncf %49 : vector<8x32xf32> to vector<8x32xbf16>
    %cst_7 = arith.constant dense<0.000000e+00> : vector<8x128xf32>
    %52 = tpu.matmul %51, %13, %cst_7 {dimension_numbers = #tpu.dot_dimension_numbers<[1], [0], [0], [1], [0, 0, 1, 1], [], []>} : vector<8x32xbf16>, vector<32x128xbf16>, vector<8x128xf32> -> vector<8x128xf32>
    %53 = arith.addf %50, %52 : vector<8x128xf32>
    %cst_8 = arith.constant 0.000000e+00 : f32
    %54 = vector.broadcast %cst_8 : f32 to vector<8x128xf32>
    %55 = arith.subf %54, %53 : vector<8x128xf32>
    %56 = math.exp %55 : vector<8x128xf32>
    %cst_9 = arith.constant 1.000000e+00 : f32
    %57 = vector.broadcast %cst_9 : f32 to vector<8x128xf32>
    %58 = arith.addf %57, %56 : vector<8x128xf32>
    %cst_10 = arith.constant 1.000000e+00 : f32
    %59 = vector.broadcast %cst_10 : f32 to vector<8x128xf32>
    %60 = arith.divf %59, %58 : vector<8x128xf32>
    %61 = math.tanh %53 : vector<8x128xf32>
    %62 = arith.select %33, %61, %60 : vector<8x128xi1>, vector<8x128xf32>
    %63 = vector.extract_strided_slice %62 {offsets = [0, 0], sizes = [8, 32], strides = [1, 1]} : vector<8x128xf32> to vector<8x32xf32>
    %64 = vector.extract_strided_slice %62 {offsets = [0, 32], sizes = [8, 32], strides = [1, 1]} : vector<8x128xf32> to vector<8x32xf32>
    %65 = vector.extract_strided_slice %62 {offsets = [0, 64], sizes = [8, 32], strides = [1, 1]} : vector<8x128xf32> to vector<8x32xf32>
    %66 = vector.extract_strided_slice %62 {offsets = [0, 96], sizes = [8, 32], strides = [1, 1]} : vector<8x128xf32> to vector<8x32xf32>
    %67 = arith.mulf %64, %47 : vector<8x32xf32>
    %68 = arith.mulf %63, %65 : vector<8x32xf32>
    %69 = arith.addf %67, %68 : vector<8x32xf32>
    %70 = math.tanh %69 : vector<8x32xf32>
    %71 = arith.mulf %66, %70 : vector<8x32xf32>
    %72 = vector.extract_strided_slice %27 {offsets = [16, 0], sizes = [8, 128], strides = [1, 1]} : vector<64x128xf32> to vector<8x128xf32>
    %73 = arith.truncf %71 : vector<8x32xf32> to vector<8x32xbf16>
    %cst_11 = arith.constant dense<0.000000e+00> : vector<8x128xf32>
    %74 = tpu.matmul %73, %13, %cst_11 {dimension_numbers = #tpu.dot_dimension_numbers<[1], [0], [0], [1], [0, 0, 1, 1], [], []>} : vector<8x32xbf16>, vector<32x128xbf16>, vector<8x128xf32> -> vector<8x128xf32>
    %75 = arith.addf %72, %74 : vector<8x128xf32>
    %cst_12 = arith.constant 0.000000e+00 : f32
    %76 = vector.broadcast %cst_12 : f32 to vector<8x128xf32>
    %77 = arith.subf %76, %75 : vector<8x128xf32>
    %78 = math.exp %77 : vector<8x128xf32>
    %cst_13 = arith.constant 1.000000e+00 : f32
    %79 = vector.broadcast %cst_13 : f32 to vector<8x128xf32>
    %80 = arith.addf %79, %78 : vector<8x128xf32>
    %cst_14 = arith.constant 1.000000e+00 : f32
    %81 = vector.broadcast %cst_14 : f32 to vector<8x128xf32>
    %82 = arith.divf %81, %80 : vector<8x128xf32>
    %83 = math.tanh %75 : vector<8x128xf32>
    %84 = arith.select %33, %83, %82 : vector<8x128xi1>, vector<8x128xf32>
    %85 = vector.extract_strided_slice %84 {offsets = [0, 0], sizes = [8, 32], strides = [1, 1]} : vector<8x128xf32> to vector<8x32xf32>
    %86 = vector.extract_strided_slice %84 {offsets = [0, 32], sizes = [8, 32], strides = [1, 1]} : vector<8x128xf32> to vector<8x32xf32>
    %87 = vector.extract_strided_slice %84 {offsets = [0, 64], sizes = [8, 32], strides = [1, 1]} : vector<8x128xf32> to vector<8x32xf32>
    %88 = vector.extract_strided_slice %84 {offsets = [0, 96], sizes = [8, 32], strides = [1, 1]} : vector<8x128xf32> to vector<8x32xf32>
    %89 = arith.mulf %86, %69 : vector<8x32xf32>
    %90 = arith.mulf %85, %87 : vector<8x32xf32>
    %91 = arith.addf %89, %90 : vector<8x32xf32>
    %92 = math.tanh %91 : vector<8x32xf32>
    %93 = arith.mulf %88, %92 : vector<8x32xf32>
    %94 = vector.extract_strided_slice %27 {offsets = [24, 0], sizes = [8, 128], strides = [1, 1]} : vector<64x128xf32> to vector<8x128xf32>
    %95 = arith.truncf %93 : vector<8x32xf32> to vector<8x32xbf16>
    %cst_15 = arith.constant dense<0.000000e+00> : vector<8x128xf32>
    %96 = tpu.matmul %95, %13, %cst_15 {dimension_numbers = #tpu.dot_dimension_numbers<[1], [0], [0], [1], [0, 0, 1, 1], [], []>} : vector<8x32xbf16>, vector<32x128xbf16>, vector<8x128xf32> -> vector<8x128xf32>
    %97 = arith.addf %94, %96 : vector<8x128xf32>
    %cst_16 = arith.constant 0.000000e+00 : f32
    %98 = vector.broadcast %cst_16 : f32 to vector<8x128xf32>
    %99 = arith.subf %98, %97 : vector<8x128xf32>
    %100 = math.exp %99 : vector<8x128xf32>
    %cst_17 = arith.constant 1.000000e+00 : f32
    %101 = vector.broadcast %cst_17 : f32 to vector<8x128xf32>
    %102 = arith.addf %101, %100 : vector<8x128xf32>
    %cst_18 = arith.constant 1.000000e+00 : f32
    %103 = vector.broadcast %cst_18 : f32 to vector<8x128xf32>
    %104 = arith.divf %103, %102 : vector<8x128xf32>
    %105 = math.tanh %97 : vector<8x128xf32>
    %106 = arith.select %33, %105, %104 : vector<8x128xi1>, vector<8x128xf32>
    %107 = vector.extract_strided_slice %106 {offsets = [0, 0], sizes = [8, 32], strides = [1, 1]} : vector<8x128xf32> to vector<8x32xf32>
    %108 = vector.extract_strided_slice %106 {offsets = [0, 32], sizes = [8, 32], strides = [1, 1]} : vector<8x128xf32> to vector<8x32xf32>
    %109 = vector.extract_strided_slice %106 {offsets = [0, 64], sizes = [8, 32], strides = [1, 1]} : vector<8x128xf32> to vector<8x32xf32>
    %110 = vector.extract_strided_slice %106 {offsets = [0, 96], sizes = [8, 32], strides = [1, 1]} : vector<8x128xf32> to vector<8x32xf32>
    %111 = arith.mulf %108, %91 : vector<8x32xf32>
    %112 = arith.mulf %107, %109 : vector<8x32xf32>
    %113 = arith.addf %111, %112 : vector<8x32xf32>
    %114 = math.tanh %113 : vector<8x32xf32>
    %115 = arith.mulf %110, %114 : vector<8x32xf32>
    %116 = vector.extract_strided_slice %27 {offsets = [32, 0], sizes = [8, 128], strides = [1, 1]} : vector<64x128xf32> to vector<8x128xf32>
    %117 = arith.truncf %115 : vector<8x32xf32> to vector<8x32xbf16>
    %cst_19 = arith.constant dense<0.000000e+00> : vector<8x128xf32>
    %118 = tpu.matmul %117, %13, %cst_19 {dimension_numbers = #tpu.dot_dimension_numbers<[1], [0], [0], [1], [0, 0, 1, 1], [], []>} : vector<8x32xbf16>, vector<32x128xbf16>, vector<8x128xf32> -> vector<8x128xf32>
    %119 = arith.addf %116, %118 : vector<8x128xf32>
    %cst_20 = arith.constant 0.000000e+00 : f32
    %120 = vector.broadcast %cst_20 : f32 to vector<8x128xf32>
    %121 = arith.subf %120, %119 : vector<8x128xf32>
    %122 = math.exp %121 : vector<8x128xf32>
    %cst_21 = arith.constant 1.000000e+00 : f32
    %123 = vector.broadcast %cst_21 : f32 to vector<8x128xf32>
    %124 = arith.addf %123, %122 : vector<8x128xf32>
    %cst_22 = arith.constant 1.000000e+00 : f32
    %125 = vector.broadcast %cst_22 : f32 to vector<8x128xf32>
    %126 = arith.divf %125, %124 : vector<8x128xf32>
    %127 = math.tanh %119 : vector<8x128xf32>
    %128 = arith.select %33, %127, %126 : vector<8x128xi1>, vector<8x128xf32>
    %129 = vector.extract_strided_slice %128 {offsets = [0, 0], sizes = [8, 32], strides = [1, 1]} : vector<8x128xf32> to vector<8x32xf32>
    %130 = vector.extract_strided_slice %128 {offsets = [0, 32], sizes = [8, 32], strides = [1, 1]} : vector<8x128xf32> to vector<8x32xf32>
    %131 = vector.extract_strided_slice %128 {offsets = [0, 64], sizes = [8, 32], strides = [1, 1]} : vector<8x128xf32> to vector<8x32xf32>
    %132 = vector.extract_strided_slice %128 {offsets = [0, 96], sizes = [8, 32], strides = [1, 1]} : vector<8x128xf32> to vector<8x32xf32>
    %133 = arith.mulf %130, %113 : vector<8x32xf32>
    %134 = arith.mulf %129, %131 : vector<8x32xf32>
    %135 = arith.addf %133, %134 : vector<8x32xf32>
    %136 = math.tanh %135 : vector<8x32xf32>
    %137 = arith.mulf %132, %136 : vector<8x32xf32>
    %138 = vector.extract_strided_slice %27 {offsets = [40, 0], sizes = [8, 128], strides = [1, 1]} : vector<64x128xf32> to vector<8x128xf32>
    %139 = arith.truncf %137 : vector<8x32xf32> to vector<8x32xbf16>
    %cst_23 = arith.constant dense<0.000000e+00> : vector<8x128xf32>
    %140 = tpu.matmul %139, %13, %cst_23 {dimension_numbers = #tpu.dot_dimension_numbers<[1], [0], [0], [1], [0, 0, 1, 1], [], []>} : vector<8x32xbf16>, vector<32x128xbf16>, vector<8x128xf32> -> vector<8x128xf32>
    %141 = arith.addf %138, %140 : vector<8x128xf32>
    %cst_24 = arith.constant 0.000000e+00 : f32
    %142 = vector.broadcast %cst_24 : f32 to vector<8x128xf32>
    %143 = arith.subf %142, %141 : vector<8x128xf32>
    %144 = math.exp %143 : vector<8x128xf32>
    %cst_25 = arith.constant 1.000000e+00 : f32
    %145 = vector.broadcast %cst_25 : f32 to vector<8x128xf32>
    %146 = arith.addf %145, %144 : vector<8x128xf32>
    %cst_26 = arith.constant 1.000000e+00 : f32
    %147 = vector.broadcast %cst_26 : f32 to vector<8x128xf32>
    %148 = arith.divf %147, %146 : vector<8x128xf32>
    %149 = math.tanh %141 : vector<8x128xf32>
    %150 = arith.select %33, %149, %148 : vector<8x128xi1>, vector<8x128xf32>
    %151 = vector.extract_strided_slice %150 {offsets = [0, 0], sizes = [8, 32], strides = [1, 1]} : vector<8x128xf32> to vector<8x32xf32>
    %152 = vector.extract_strided_slice %150 {offsets = [0, 32], sizes = [8, 32], strides = [1, 1]} : vector<8x128xf32> to vector<8x32xf32>
    %153 = vector.extract_strided_slice %150 {offsets = [0, 64], sizes = [8, 32], strides = [1, 1]} : vector<8x128xf32> to vector<8x32xf32>
    %154 = vector.extract_strided_slice %150 {offsets = [0, 96], sizes = [8, 32], strides = [1, 1]} : vector<8x128xf32> to vector<8x32xf32>
    %155 = arith.mulf %152, %135 : vector<8x32xf32>
    %156 = arith.mulf %151, %153 : vector<8x32xf32>
    %157 = arith.addf %155, %156 : vector<8x32xf32>
    %158 = math.tanh %157 : vector<8x32xf32>
    %159 = arith.mulf %154, %158 : vector<8x32xf32>
    %160 = vector.extract_strided_slice %27 {offsets = [48, 0], sizes = [8, 128], strides = [1, 1]} : vector<64x128xf32> to vector<8x128xf32>
    %161 = arith.truncf %159 : vector<8x32xf32> to vector<8x32xbf16>
    %cst_27 = arith.constant dense<0.000000e+00> : vector<8x128xf32>
    %162 = tpu.matmul %161, %13, %cst_27 {dimension_numbers = #tpu.dot_dimension_numbers<[1], [0], [0], [1], [0, 0, 1, 1], [], []>} : vector<8x32xbf16>, vector<32x128xbf16>, vector<8x128xf32> -> vector<8x128xf32>
    %163 = arith.addf %160, %162 : vector<8x128xf32>
    %cst_28 = arith.constant 0.000000e+00 : f32
    %164 = vector.broadcast %cst_28 : f32 to vector<8x128xf32>
    %165 = arith.subf %164, %163 : vector<8x128xf32>
    %166 = math.exp %165 : vector<8x128xf32>
    %cst_29 = arith.constant 1.000000e+00 : f32
    %167 = vector.broadcast %cst_29 : f32 to vector<8x128xf32>
    %168 = arith.addf %167, %166 : vector<8x128xf32>
    %cst_30 = arith.constant 1.000000e+00 : f32
    %169 = vector.broadcast %cst_30 : f32 to vector<8x128xf32>
    %170 = arith.divf %169, %168 : vector<8x128xf32>
    %171 = math.tanh %163 : vector<8x128xf32>
    %172 = arith.select %33, %171, %170 : vector<8x128xi1>, vector<8x128xf32>
    %173 = vector.extract_strided_slice %172 {offsets = [0, 0], sizes = [8, 32], strides = [1, 1]} : vector<8x128xf32> to vector<8x32xf32>
    %174 = vector.extract_strided_slice %172 {offsets = [0, 32], sizes = [8, 32], strides = [1, 1]} : vector<8x128xf32> to vector<8x32xf32>
    %175 = vector.extract_strided_slice %172 {offsets = [0, 64], sizes = [8, 32], strides = [1, 1]} : vector<8x128xf32> to vector<8x32xf32>
    %176 = vector.extract_strided_slice %172 {offsets = [0, 96], sizes = [8, 32], strides = [1, 1]} : vector<8x128xf32> to vector<8x32xf32>
    %177 = arith.mulf %174, %157 : vector<8x32xf32>
    %178 = arith.mulf %173, %175 : vector<8x32xf32>
    %179 = arith.addf %177, %178 : vector<8x32xf32>
    %180 = math.tanh %179 : vector<8x32xf32>
    %181 = arith.mulf %176, %180 : vector<8x32xf32>
    %182 = vector.extract_strided_slice %27 {offsets = [56, 0], sizes = [8, 128], strides = [1, 1]} : vector<64x128xf32> to vector<8x128xf32>
    %183 = arith.truncf %181 : vector<8x32xf32> to vector<8x32xbf16>
    %cst_31 = arith.constant dense<0.000000e+00> : vector<8x128xf32>
    %184 = tpu.matmul %183, %13, %cst_31 {dimension_numbers = #tpu.dot_dimension_numbers<[1], [0], [0], [1], [0, 0, 1, 1], [], []>} : vector<8x32xbf16>, vector<32x128xbf16>, vector<8x128xf32> -> vector<8x128xf32>
    %185 = arith.addf %182, %184 : vector<8x128xf32>
    %cst_32 = arith.constant 0.000000e+00 : f32
    %186 = vector.broadcast %cst_32 : f32 to vector<8x128xf32>
    %187 = arith.subf %186, %185 : vector<8x128xf32>
    %188 = math.exp %187 : vector<8x128xf32>
    %cst_33 = arith.constant 1.000000e+00 : f32
    %189 = vector.broadcast %cst_33 : f32 to vector<8x128xf32>
    %190 = arith.addf %189, %188 : vector<8x128xf32>
    %cst_34 = arith.constant 1.000000e+00 : f32
    %191 = vector.broadcast %cst_34 : f32 to vector<8x128xf32>
    %192 = arith.divf %191, %190 : vector<8x128xf32>
    %193 = math.tanh %185 : vector<8x128xf32>
    %194 = arith.select %33, %193, %192 : vector<8x128xi1>, vector<8x128xf32>
    %195 = vector.extract_strided_slice %194 {offsets = [0, 0], sizes = [8, 32], strides = [1, 1]} : vector<8x128xf32> to vector<8x32xf32>
    %196 = vector.extract_strided_slice %194 {offsets = [0, 32], sizes = [8, 32], strides = [1, 1]} : vector<8x128xf32> to vector<8x32xf32>
    %197 = vector.extract_strided_slice %194 {offsets = [0, 64], sizes = [8, 32], strides = [1, 1]} : vector<8x128xf32> to vector<8x32xf32>
    %198 = vector.extract_strided_slice %194 {offsets = [0, 96], sizes = [8, 32], strides = [1, 1]} : vector<8x128xf32> to vector<8x32xf32>
    %199 = arith.mulf %196, %179 : vector<8x32xf32>
    %200 = arith.mulf %195, %197 : vector<8x32xf32>
    %201 = arith.addf %199, %200 : vector<8x32xf32>
    %202 = math.tanh %201 : vector<8x32xf32>
    %203 = arith.mulf %198, %202 : vector<8x32xf32>
    %204 = arith.truncf %203 : vector<8x32xf32> to vector<8x32xbf16>
    %cst_35 = arith.constant dense<0.000000e+00> : vector<8x128xf32>
    %205 = tpu.matmul %204, %15, %cst_35 {dimension_numbers = #tpu.dot_dimension_numbers<[1], [0], [0], [1], [0, 0, 1, 1], [], []>} : vector<8x32xbf16>, vector<32x128xbf16>, vector<8x128xf32> -> vector<8x128xf32>
    %206 = vector.broadcast %4 : vector<1x128xf32> to vector<8x128xf32>
    %207 = arith.addf %205, %206 : vector<8x128xf32>
    %cst_36 = arith.constant dense<0.000000e+00> : vector<128xf32>
    %208 = vector.multi_reduction <add>, %207, %cst_36 [0] : vector<8x128xf32> to vector<128xf32>
    %209 = vector.shape_cast %208 : vector<128xf32> to vector<1x128xf32>
    %cst_37 = arith.constant 8.000000e+00 : f32
    %210 = vector.broadcast %cst_37 : f32 to vector<1x128xf32>
    %211 = arith.divf %209, %210 : vector<1x128xf32>
    %212 = vector.broadcast %211 : vector<1x128xf32> to vector<8x128xf32>
    %213 = arith.subf %207, %212 : vector<8x128xf32>
    %214 = arith.mulf %213, %213 : vector<8x128xf32>
    %cst_38 = arith.constant dense<0.000000e+00> : vector<128xf32>
    %215 = vector.multi_reduction <add>, %214, %cst_38 [0] : vector<8x128xf32> to vector<128xf32>
    %216 = vector.shape_cast %215 : vector<128xf32> to vector<1x128xf32>
    %cst_39 = arith.constant 8.000000e+00 : f32
    %217 = vector.broadcast %cst_39 : f32 to vector<1x128xf32>
    %218 = arith.divf %216, %217 : vector<1x128xf32>
    %219 = vector.broadcast %211 : vector<1x128xf32> to vector<8x128xf32>
    %220 = arith.subf %207, %219 : vector<8x128xf32>
    %221 = vector.broadcast %5 : vector<1x128xf32> to vector<8x128xf32>
    %222 = arith.mulf %221, %220 : vector<8x128xf32>
    %cst_40 = arith.constant 9.99999974E-6 : f32
    %223 = vector.broadcast %cst_40 : f32 to vector<1x128xf32>
    %224 = arith.addf %218, %223 : vector<1x128xf32>
    %225 = math.rsqrt %224 : vector<1x128xf32>
    %226 = vector.broadcast %225 : vector<1x128xf32> to vector<8x128xf32>
    %227 = arith.mulf %222, %226 : vector<8x128xf32>
    %228 = vector.broadcast %6 : vector<1x128xf32> to vector<8x128xf32>
    %229 = arith.addf %227, %228 : vector<8x128xf32>
    %cst_41 = arith.constant 0.000000e+00 : f32
    %230 = vector.broadcast %cst_41 : f32 to vector<8x128xf32>
    %231 = arith.cmpf oge, %229, %230 : vector<8x128xf32>
    %cst_42 = arith.constant 0.00999999977 : f32
    %232 = vector.broadcast %cst_42 : f32 to vector<8x128xf32>
    %233 = arith.mulf %232, %229 : vector<8x128xf32>
    %234 = arith.select %231, %229, %233 : vector<8x128xi1>, vector<8x128xf32>
    %235 = vector.broadcast %7 : vector<1x128xf32> to vector<8x128xf32>
    %236 = arith.mulf %234, %235 : vector<8x128xf32>
    %cst_43 = arith.constant dense<0.000000e+00> : vector<8xf32>
    %237 = vector.multi_reduction <add>, %236, %cst_43 [1] : vector<8x128xf32> to vector<8xf32>
    %238 = vector.shape_cast %237 : vector<8xf32> to vector<8x1xf32>
    %239 = vector.broadcast %8 : vector<1x1xf32> to vector<8x1xf32>
    %240 = arith.addf %238, %239 : vector<8x1xf32>
    %cst_44 = arith.constant dense<0.000000e+00> : vector<1xf32>
    %241 = vector.multi_reduction <add>, %240, %cst_44 [0] : vector<8x1xf32> to vector<1xf32>
    %242 = vector.shape_cast %241 : vector<1xf32> to vector<1x1xf32>
    %cst_45 = arith.constant 8.000000e+00 : f32
    %243 = vector.broadcast %cst_45 : f32 to vector<1x1xf32>
    %244 = arith.divf %242, %243 : vector<1x1xf32>
    %245 = vector.broadcast %244 : vector<1x1xf32> to vector<8x1xf32>
    %246 = arith.subf %240, %245 : vector<8x1xf32>
    %247 = arith.mulf %246, %246 : vector<8x1xf32>
    %cst_46 = arith.constant dense<0.000000e+00> : vector<1xf32>
    %248 = vector.multi_reduction <add>, %247, %cst_46 [0] : vector<8x1xf32> to vector<1xf32>
    %249 = vector.shape_cast %248 : vector<1xf32> to vector<1x1xf32>
    %cst_47 = arith.constant 8.000000e+00 : f32
    %250 = vector.broadcast %cst_47 : f32 to vector<1x1xf32>
    %251 = arith.divf %249, %250 : vector<1x1xf32>
    %252 = vector.broadcast %244 : vector<1x1xf32> to vector<8x1xf32>
    %253 = arith.subf %240, %252 : vector<8x1xf32>
    %254 = vector.broadcast %9 : vector<1x1xf32> to vector<8x1xf32>
    %255 = arith.mulf %254, %253 : vector<8x1xf32>
    %cst_48 = arith.constant 9.99999974E-6 : f32
    %256 = vector.broadcast %cst_48 : f32 to vector<1x1xf32>
    %257 = arith.addf %251, %256 : vector<1x1xf32>
    %258 = math.rsqrt %257 : vector<1x1xf32>
    %259 = vector.broadcast %258 : vector<1x1xf32> to vector<8x1xf32>
    %260 = arith.mulf %255, %259 : vector<8x1xf32>
    %261 = vector.broadcast %10 : vector<1x1xf32> to vector<8x1xf32>
    %262 = arith.addf %260, %261 : vector<8x1xf32>
    %cst_49 = arith.constant 0.000000e+00 : f32
    %263 = vector.broadcast %cst_49 : f32 to vector<8x1xf32>
    %264 = arith.cmpf oge, %262, %263 : vector<8x1xf32>
    %cst_50 = arith.constant 0.00999999977 : f32
    %265 = vector.broadcast %cst_50 : f32 to vector<8x1xf32>
    %266 = arith.mulf %265, %262 : vector<8x1xf32>
    %267 = arith.select %264, %262, %266 : vector<8x1xi1>, vector<8x1xf32>
    %c0_51 = arith.constant 0 : index
    %c0_52 = arith.constant 0 : index
    %268 = vector.load %arg3[%c0_51, %c0_52] : memref<8x1xf32, #tpu.memory_space<vmem>>, vector<8x1xf32>
    tpu.vector_store %arg3[%c0_51, %c0_52], %267 {strides = array<i32>} : memref<8x1xf32, #tpu.memory_space<vmem>>, vector<8x1xf32>,
    return
  }
}

</mosaic_0001>

<bundles_post_ra>
// kernel: trajectory_discriminator.1
= control target key start
LH: loop header
LB: loop body
LE: loop exit
PB: predicated region body
PF: predicated region fallthrough
CT: control target
= control target key end

     0   :  { %v816_v0 = vmov 0   ;;  %v817_v2 = vmov 1   ;;  %v143_v17 = vlaneseq  ;;  %s819_s16 = smov 32   ;;  %s820_s17 = smov 96   ;;  %vm184_vm7 = vcmask 261120   ;;  %s1006_s0 = inlined_call_operand.vmem [shape: f32[64,2], index: 0, kind: input, shape index: {}]   ;;  %s1007_s2 = inlined_call_operand.vmem [shape: f32[8,128], index: 2, kind: input, shape index: {}]   ;;  %s1008_s1 = inlined_call_operand.vmem [shape: f32[64,128], index: 1, kind: input, shape index: {}]   ;;  %s1009_s3 = inlined_call_operand.vmem [shape: f32[8,1], index: 3, kind: output, shape index: {}]  }
   0x1   :  { %740 = vset.pattern.permute.xlu0 %v816_v0  ;;  %v28_v1 = vld [vmem:[%s1006_s0] sm:$0xff]  ;;  %743 = vset.pattern.permute.xlu1 %v817_v2  ;;  %v18_v35 = vld [vmem:[%s1008_s1 + $0x10] sm:$0xff]  ;;  %v19_v36 = vld [vmem:[%s1008_s1 + $0x18] sm:$0xff] }
   0x2   :  { %38 = vperm.xlu0 %740, %v28_v1   ;;  %742 = vset.pattern.permute.xlu2 %v816_v0  ;;  %v854_v4 = vld [vmem:[%s1007_s2] sm:$0xff]  ;;  %v144_v19 = vand.u32 127, %v143_v17  ;;  %s818_s2 = smov 64   ;;  %v25_v38 = vpack.c.bf16 %v19_v36, %v18_v35  ;;  %v17_v39 = vld [vmem:[%s1008_s1 + $0x8] sm:$0xff]  ;;  %v23_v25 = vld [vmem:[%s1008_s1 + $0x38] sm:$0xff] }
   0x3   :  { %v857_v5 = vperm.slane %v854_v4, 1  ;;  %v860_v6 = vperm.slane %v854_v4, 2  ;;  %v864_v9 = vperm.slane %v854_v4, 0  ;;  %v16_v37 = vld [vmem:[%s1008_s1] sm:$0xff]  ;;  %v29_v44 = vld [vmem:[%s1006_s0 + $0x8] sm:$0xff] }
   0x4   :  { %vm145_vm0 = vcmp.ge.s32.totalorder %v144_v19, 64  ;;  %vm146_vm1 = vcmp.lt.s32.totalorder %v144_v19, 96  ;;  %194 = vmatpush.bf16.msra.mxu0 %v25_v38  ;;  %v24_v40 = vpack.c.bf16 %v17_v39, %v16_v37  ;;  %257 = vmatpush.bf16.msra.mxu1 %v25_v38 }
   0x5   :  { %vm868_vm3 = vmand %vm145_vm0, %vm146_vm1  ;;  %316 = vmatpush.bf16.msra.mxu2 %v25_v38  ;;  %375 = vmatpush.bf16.msra.mxu3 %v25_v38 }
   0x8   :  { %195 = vmatpush.bf16.msra.mxu0 %v24_v40  ;;  %258 = vmatpush.bf16.msra.mxu1 %v24_v40 }
   0x9   :  { %317 = vmatpush.bf16.msra.mxu2 %v24_v40  ;;  %376 = vmatpush.bf16.msra.mxu3 %v24_v40 }
   0xa   :  { %741 = vset.pattern.permute.xlu0 %v817_v2 }
   0xb   :  { %86 = vperm.xlu0 %741, %v28_v1  }
   0xc   :  { %434 = vmatpush.bf16.msrb.mxu0 %v25_v38  ;;  %493 = vmatpush.bf16.msrb.mxu1 %v25_v38 }
   0xd   :  { %552 = vmatpush.bf16.msrb.mxu2 %v25_v38 }
  0x10   :  { %435 = vmatpush.bf16.msrb.mxu0 %v24_v40  ;;  %494 = vmatpush.bf16.msrb.mxu1 %v24_v40 }
  0x11   :  { %553 = vmatpush.bf16.msrb.mxu2 %v24_v40 }
  0x74   :  { %v39_v3 = vpop.permute.xlu0 %38 }
  0x75   :  { %v77_v8 = vmul.f32 %v857_v5, %v39_v3 }
  0x7d   :  { %v87_v7 = vpop.permute.xlu0 %86 }
  0x7e   :  { %v118_v10 = vmul.f32 %v860_v6, %v87_v7 }
  0x80   :  { %v126_v11 = vadd.f32 %v118_v10, %v77_v8 }
  0x82   :  { %v135_v12 = vadd.f32 %v864_v9, %v126_v11 }
  0x84   :  { %v148_v13 = vsub.f32 0.0, %v135_v12 }
  0x86   :  { %v149_v14 = vmul.f32 1.442695, %v148_v13 }
  0x88   :  { %746 = vpow2.f32 %v149_v14 }
  0x8e   :  { %v747_v15 = vpop.eup %746 }
  0x8f   :  { %v151_v16 = vadd.f32 1.0, %v747_v15 }
  0x91   :  { %748 = vrcp.f32 %v151_v16  ;;  %v163_v22 = vand.u32 2147483648, %v151_v16  ;;  %v161_v24 = vand.u32 2147483647, %v151_v16  ;;  %vm157_vm4 = vweird.f32 %v151_v16 }
  0x92   :  { %750 = vtanh.f32 %v135_v12 }
  0x93   :  { %v164_v27 = vor.u32 1.1754944e-38, %v163_v22  ;;  %vm162_vm6 = vcmp.eq.f32.partialorder %v161_v24, 8.507059e+37 }
  0x97   :  { %v749_v18 = vpop.eup %748 }
  0x98   :  { %v153_v20 = vmul.f32 %v749_v18, %v151_v16  ;;  %vm158_vm2 = vweird.f32 %v749_v18  ;;  %v751_v29 = vpop.eup %750 }
  0x99   :  { %vm159_vm5 = vmor %vm157_vm4, %vm158_vm2 }
  0x9a   :  { %v154_v21 = vsub.f32 1.0, %v153_v20 }
  0x9c   :  { %v155_v23 = vmul.f32 %v749_v18, %v154_v21  ;;  %v30_v21 = vld [vmem:[%s1006_s0 + $0x10] sm:$0xff] }
  0x9e   :  { %v156_v26 = vadd.f32 %v749_v18, %v155_v23 }
  0xa0   :  { %v160_v28 = vsel %vm159_vm5, %v749_v18, %v156_v26 }
  0xa1   :  { %v165_v30 = vsel %vm162_vm6, %v164_v27, %v160_v28 }
  0xa2   :  { %v168_v31 = vsel %vm868_vm3, %v751_v29, %v165_v30 }
  0xa3   :  { %170 = vrot.lane.b32.xlu1 %v168_v31, %s818_s2 }
 0x115   :  { %v171_v32 = vpop.permute.xlu1 %170 }
 0x116   :  { %v173_v33 = vmul.f32 %v171_v32, %v168_v31 }
 0x118   :  { %752 = vtanh.f32 %v173_v33  ;;  %224 = vrot.lane.b32.xlu0 %v173_v33, %s819_s16 }
 0x11e   :  { %v753_v34 = vpop.eup %752 }
 0x11f   :  { %176 = vrot.lane.b32.xlu1 %v753_v34, %s820_s17 }
 0x127   :  { %90 = vperm.xlu1 %743, %v29_v44  }
 0x12f   :  { %744 = vset.pattern.permute.xlu1 %v816_v0 }
 0x18a   :  { %v225_v13 = vpop.permute.xlu0 %224 }
 0x191   :  { %v177_v41 = vpop.permute.xlu1 %176 }
 0x192   :  { %v179_v42 = vmul.f32 %v177_v41, %v168_v31 }
 0x194   :  { %v180_v43 = vpack.c.bf16 %v179_v42, %v179_v42 }
 0x196   :  { %182 = vrot.lane.b32.xlu2 %v180_v43, %s819_s16 }
 0x199   :  { %v91_v47 = vpop.permute.xlu1 %90 }
 0x19a   :  { %v119_v49 = vmul.f32 %v860_v6, %v91_v47 }
 0x19e   :  { %43 = vperm.xlu2 %742, %v29_v44  }
 0x1a6   :  { %745 = vset.pattern.permute.xlu2 %v817_v2 }
 0x1f0   :  { %v183_v45 = vpop.permute.xlu2 %182 }
 0x1f1   :  { %724 = vmatmul.msk.bf16.vlgmr.msra.gmra.mxu0 %vm184_vm7, %v183_v45 }
 0x1f8   :  { %v44_v46 = vpop.permute.xlu2 %43 }
 0x1f9   :  { %v78_v48 = vmul.f32 %v857_v5, %v44_v46 }
 0x1fb   :  { %v127_v50 = vadd.f32 %v119_v49, %v78_v48 }
 0x1fd   :  { %v136_v51 = vadd.f32 %v864_v9, %v127_v50 }
 0x26e   :  { %v197_v52 = vpop.f32.mrf.mxu0 }
 0x26f   :  { %v201_v53 = vadd.f32 %v197_v52, %v136_v51  ;;  %v31_v51 = vld [vmem:[%s1006_s0 + $0x18] sm:$0xff] }
 0x271   :  { %v202_v54 = vsub.f32 0.0, %v201_v53 }
 0x273   :  { %v203_v55 = vmul.f32 1.442695, %v202_v54 }
 0x275   :  { %754 = vpow2.f32 %v203_v55 }
 0x276   :  { %v199_v56 = vpop.f32.mrf.mxu0 }
 0x27b   :  { %v755_v57 = vpop.eup %754 }
 0x27c   :  { %v205_v58 = vadd.f32 1.0, %v755_v57 }
 0x27e   :  { %756 = vrcp.f32 %v205_v58  ;;  %v217_v62 = vand.u32 2147483648, %v205_v58  ;;  %v215_v0 = vand.u32 2147483647, %v205_v58  ;;  %vm211_vm9 = vweird.f32 %v205_v58 }
 0x27f   :  { %758 = vtanh.f32 %v201_v53 }
 0x280   :  { %v218_v2 = vor.u32 1.1754944e-38, %v217_v62  ;;  %vm216_vm11 = vcmp.eq.f32.partialorder %v215_v0, 8.507059e+37 }
 0x284   :  { %v757_v59 = vpop.eup %756 }
 0x285   :  { %v207_v60 = vmul.f32 %v757_v59, %v205_v58  ;;  %vm212_vm8 = vweird.f32 %v757_v59  ;;  %v759_v7 = vpop.eup %758 }
 0x286   :  { %vm213_vm10 = vmor %vm211_vm9, %vm212_vm8 }
 0x287   :  { %v208_v61 = vsub.f32 1.0, %v207_v60 }
 0x289   :  { %v209_v63 = vmul.f32 %v757_v59, %v208_v61 }
 0x28b   :  { %v210_v1 = vadd.f32 %v757_v59, %v209_v63 }
 0x28d   :  { %v214_v3 = vsel %vm213_vm10, %v757_v59, %v210_v1 }
 0x28e   :  { %v219_v8 = vsel %vm216_vm11, %v218_v2, %v214_v3 }
 0x28f   :  { %v222_v10 = vsel %vm868_vm3, %v759_v7, %v219_v8 }
 0x290   :  { %229 = vrot.lane.b32.xlu2 %v222_v10, %s818_s2  ;;  %v227_v14 = vmul.f32 %v225_v13, %v222_v10 }
 0x2ea   :  { %v230_v11 = vpop.permute.xlu2 %229 }
 0x2eb   :  { %v232_v12 = vmul.f32 %v230_v11, %v222_v10 }
 0x2ed   :  { %234 = vrot.lane.b32.xlu1 %v232_v12, %s819_s16 }
 0x2f5   :  { %48 = vperm.xlu1 %744, %v30_v21  }
 0x35f   :  { %v235_v15 = vpop.permute.xlu1 %234 }
 0x360   :  { %v237_v16 = vadd.f32 %v235_v15, %v227_v14 }
 0x362   :  { %760 = vtanh.f32 %v237_v16 }
 0x367   :  { %v49_v23 = vpop.permute.xlu1 %48 }
 0x368   :  { %v761_v17 = vpop.eup %760  ;;  %v79_v26 = vmul.f32 %v857_v5, %v49_v23 }
 0x369   :  { %240 = vrot.lane.b32.xlu2 %v761_v17, %s818_s2 }
 0x371   :  { %94 = vperm.xlu2 %745, %v30_v21  }
 0x3c3   :  { %v241_v18 = vpop.permute.xlu2 %240 }
 0x3c4   :  { %v243_v19 = vmul.f32 %v241_v18, %v222_v10 }
 0x3c6   :  { %v244_v20 = vpack.c.bf16 %v243_v19, %v243_v19 }
 0x3c8   :  { %246 = vrot.lane.b32.xlu0 %v244_v20, %s819_s16 }
 0x3cb   :  { %v95_v24 = vpop.permute.xlu2 %94 }
 0x3cc   :  { %v120_v27 = vmul.f32 %v860_v6, %v95_v24 }
 0x3ce   :  { %v128_v28 = vadd.f32 %v120_v27, %v79_v26 }
 0x3d0   :  { %v137_v29 = vadd.f32 %v864_v9, %v128_v28  ;;  %v32_v28 = vld [vmem:[%s1006_s0 + $0x20] sm:$0xff] }
 0x43a   :  { %v247_v22 = vpop.permute.xlu0 %246 }
 0x43b   :  { %725 = vmatmul.msk.bf16.vlgmr.msra.gmra.mxu1 %vm184_vm7, %v247_v22 }
 0x4b8   :  { %v260_v30 = vpop.f32.mrf.mxu1 }
 0x4b9   :  { %v264_v31 = vadd.f32 %v260_v30, %v137_v29 }
 0x4bb   :  { %v265_v32 = vsub.f32 0.0, %v264_v31 }
 0x4bd   :  { %v266_v33 = vmul.f32 1.442695, %v265_v32 }
 0x4bf   :  { %762 = vpow2.f32 %v266_v33 }
 0x4c0   :  { %v262_v34 = vpop.f32.mrf.mxu1 }
 0x4c5   :  { %v763_v35 = vpop.eup %762 }
 0x4c6   :  { %v268_v36 = vadd.f32 1.0, %v763_v35 }
 0x4c8   :  { %764 = vrcp.f32 %v268_v36  ;;  %v280_v40 = vand.u32 2147483648, %v268_v36  ;;  %v278_v42 = vand.u32 2147483647, %v268_v36  ;;  %vm274_vm13 = vweird.f32 %v268_v36 }
 0x4c9   :  { %766 = vtanh.f32 %v264_v31 }
 0x4ca   :  { %v281_v44 = vor.u32 1.1754944e-38, %v280_v40  ;;  %vm279_vm15 = vcmp.eq.f32.partialorder %v278_v42, 8.507059e+37 }
 0x4ce   :  { %v765_v37 = vpop.eup %764 }
 0x4cf   :  { %v270_v38 = vmul.f32 %v765_v37, %v268_v36  ;;  %vm275_vm12 = vweird.f32 %v765_v37  ;;  %v767_v46 = vpop.eup %766 }
 0x4d0   :  { %vm276_vm14 = vmor %vm274_vm13, %vm275_vm12 }
 0x4d1   :  { %v271_v39 = vsub.f32 1.0, %v270_v38 }
 0x4d3   :  { %v272_v41 = vmul.f32 %v765_v37, %v271_v39 }
 0x4d5   :  { %v273_v43 = vadd.f32 %v765_v37, %v272_v41 }
 0x4d7   :  { %v277_v45 = vsel %vm276_vm14, %v765_v37, %v273_v43 }
 0x4d8   :  { %v282_v47 = vsel %vm279_vm15, %v281_v44, %v277_v45 }
 0x4d9   :  { %v285_v48 = vsel %vm868_vm3, %v767_v46, %v282_v47 }
 0x4da   :  { %288 = vrot.lane.b32.xlu0 %v285_v48, %s818_s2  ;;  %v286_v52 = vmul.f32 %v285_v48, %v237_v16 }
 0x54c   :  { %v289_v49 = vpop.permute.xlu0 %288 }
 0x54d   :  { %v291_v50 = vmul.f32 %v289_v49, %v285_v48 }
 0x54f   :  { %293 = vrot.lane.b32.xlu1 %v291_v50, %s819_s16 }
 0x557   :  { %53 = vperm.xlu1 %744, %v31_v51  }
 0x5c1   :  { %v294_v53 = vpop.permute.xlu1 %293 }
 0x5c2   :  { %v296_v54 = vadd.f32 %v294_v53, %v286_v52 }
 0x5c4   :  { %768 = vtanh.f32 %v296_v54 }
 0x5c9   :  { %v54_v61 = vpop.permute.xlu1 %53 }
 0x5ca   :  { %v769_v55 = vpop.eup %768  ;;  %v80_v63 = vmul.f32 %v857_v5, %v54_v61 }
 0x5cb   :  { %299 = vrot.lane.b32.xlu2 %v769_v55, %s818_s2 }
 0x5d3   :  { %98 = vperm.xlu2 %745, %v31_v51  }
 0x625   :  { %v300_v56 = vpop.permute.xlu2 %299 }
 0x626   :  { %v302_v57 = vmul.f32 %v300_v56, %v285_v48 }
 0x628   :  { %v303_v58 = vpack.c.bf16 %v302_v57, %v302_v57 }
 0x62a   :  { %305 = vrot.lane.b32.xlu0 %v303_v58, %s819_s16 }
 0x62d   :  { %v99_v60 = vpop.permute.xlu2 %98 }
 0x62e   :  { %v121_v62 = vmul.f32 %v860_v6, %v99_v60 }
 0x630   :  { %v129_v0 = vadd.f32 %v121_v62, %v80_v63 }
 0x632   :  { %v138_v1 = vadd.f32 %v864_v9, %v129_v0  ;;  %v33_v0 = vld [vmem:[%s1006_s0 + $0x28] sm:$0xff] }
 0x69c   :  { %v306_v59 = vpop.permute.xlu0 %305 }
 0x69d   :  { %726 = vmatmul.msk.bf16.vlgmr.msra.gmra.mxu2 %vm184_vm7, %v306_v59 }
 0x720   :  { %v319_v2 = vpop.f32.mrf.mxu2 }
 0x721   :  { %v323_v3 = vadd.f32 %v319_v2, %v138_v1 }
 0x723   :  { %v324_v7 = vsub.f32 0.0, %v323_v3 }
 0x725   :  { %v325_v8 = vmul.f32 1.442695, %v324_v7 }
 0x727   :  { %770 = vpow2.f32 %v325_v8 }
 0x728   :  { %v321_v10 = vpop.f32.mrf.mxu2 }
 0x72d   :  { %v771_v11 = vpop.eup %770 }
 0x72e   :  { %v327_v12 = vadd.f32 1.0, %v771_v11 }
 0x730   :  { %772 = vrcp.f32 %v327_v12  ;;  %v339_v16 = vand.u32 2147483648, %v327_v12  ;;  %v337_v18 = vand.u32 2147483647, %v327_v12  ;;  %vm333_vm1 = vweird.f32 %v327_v12 }
 0x731   :  { %774 = vtanh.f32 %v323_v3 }
 0x732   :  { %v340_v20 = vor.u32 1.1754944e-38, %v339_v16  ;;  %vm338_vm4 = vcmp.eq.f32.partialorder %v337_v18, 8.507059e+37 }
 0x736   :  { %v773_v13 = vpop.eup %772 }
 0x737   :  { %v329_v14 = vmul.f32 %v773_v13, %v327_v12  ;;  %vm334_vm0 = vweird.f32 %v773_v13  ;;  %v775_v22 = vpop.eup %774 }
 0x738   :  { %vm335_vm2 = vmor %vm333_vm1, %vm334_vm0 }
 0x739   :  { %v330_v15 = vsub.f32 1.0, %v329_v14 }
 0x73b   :  { %v331_v17 = vmul.f32 %v773_v13, %v330_v15 }
 0x73d   :  { %v332_v19 = vadd.f32 %v773_v13, %v331_v17 }
 0x73f   :  { %v336_v21 = vsel %vm335_vm2, %v773_v13, %v332_v19 }
 0x740   :  { %v341_v23 = vsel %vm338_vm4, %v340_v20, %v336_v21 }
 0x741   :  { %v344_v24 = vsel %vm868_vm3, %v775_v22, %v341_v23 }
 0x742   :  { %347 = vrot.lane.b32.xlu0 %v344_v24, %s818_s2  ;;  %v345_v29 = vmul.f32 %v344_v24, %v296_v54 }
 0x7b4   :  { %v348_v26 = vpop.permute.xlu0 %347 }
 0x7b5   :  { %v350_v27 = vmul.f32 %v348_v26, %v344_v24 }
 0x7b7   :  { %352 = vrot.lane.b32.xlu1 %v350_v27, %s819_s16 }
 0x7bf   :  { %58 = vperm.xlu1 %744, %v32_v28  }
 0x829   :  { %v353_v30 = vpop.permute.xlu1 %352 }
 0x82a   :  { %v355_v31 = vadd.f32 %v353_v30, %v345_v29 }
 0x82c   :  { %776 = vtanh.f32 %v355_v31 }
 0x831   :  { %v59_v38 = vpop.permute.xlu1 %58 }
 0x832   :  { %v777_v32 = vpop.eup %776  ;;  %v81_v40 = vmul.f32 %v857_v5, %v59_v38 }
 0x833   :  { %358 = vrot.lane.b32.xlu2 %v777_v32, %s818_s2 }
 0x83b   :  { %102 = vperm.xlu2 %745, %v32_v28  }
 0x88d   :  { %v359_v33 = vpop.permute.xlu2 %358 }
 0x88e   :  { %v361_v34 = vmul.f32 %v359_v33, %v344_v24 }
 0x890   :  { %v362_v35 = vpack.c.bf16 %v361_v34, %v361_v34 }
 0x892   :  { %364 = vrot.lane.b32.xlu0 %v362_v35, %s819_s16 }
 0x895   :  { %v103_v37 = vpop.permute.xlu2 %102 }
 0x896   :  { %v122_v39 = vmul.f32 %v860_v6, %v103_v37 }
 0x898   :  { %v130_v41 = vadd.f32 %v122_v39, %v81_v40 }
 0x89a   :  { %v139_v42 = vadd.f32 %v864_v9, %v130_v41  ;;  %v34_v41 = vld [vmem:[%s1006_s0 + $0x30] sm:$0xff] }
 0x904   :  { %v365_v36 = vpop.permute.xlu0 %364 }
 0x905   :  { %727 = vmatmul.msk.bf16.vlgmr.msra.gmra.mxu3 %vm184_vm7, %v365_v36 }
 0x988   :  { %v378_v43 = vpop.f32.mrf.mxu3 }
 0x989   :  { %v382_v44 = vadd.f32 %v378_v43, %v139_v42 }
 0x98b   :  { %v383_v45 = vsub.f32 0.0, %v382_v44 }
 0x98d   :  { %v384_v46 = vmul.f32 1.442695, %v383_v45 }
 0x98f   :  { %778 = vpow2.f32 %v384_v46 }
 0x990   :  { %v380_v47 = vpop.f32.mrf.mxu3 }
 0x995   :  { %v779_v48 = vpop.eup %778 }
 0x996   :  { %v386_v49 = vadd.f32 1.0, %v779_v48 }
 0x998   :  { %780 = vrcp.f32 %v386_v49  ;;  %v398_v53 = vand.u32 2147483648, %v386_v49  ;;  %v396_v55 = vand.u32 2147483647, %v386_v49  ;;  %vm392_vm6 = vweird.f32 %v386_v49 }
 0x999   :  { %782 = vtanh.f32 %v382_v44 }
 0x99a   :  { %v399_v57 = vor.u32 1.1754944e-38, %v398_v53  ;;  %vm397_vm9 = vcmp.eq.f32.partialorder %v396_v55, 8.507059e+37 }
 0x99e   :  { %v781_v50 = vpop.eup %780 }
 0x99f   :  { %v388_v51 = vmul.f32 %v781_v50, %v386_v49  ;;  %vm393_vm5 = vweird.f32 %v781_v50  ;;  %v783_v59 = vpop.eup %782 }
 0x9a0   :  { %vm394_vm8 = vmor %vm392_vm6, %vm393_vm5 }
 0x9a1   :  { %v389_v52 = vsub.f32 1.0, %v388_v51 }
 0x9a3   :  { %v390_v54 = vmul.f32 %v781_v50, %v389_v52 }
 0x9a5   :  { %v391_v56 = vadd.f32 %v781_v50, %v390_v54 }
 0x9a7   :  { %v395_v58 = vsel %vm394_vm8, %v781_v50, %v391_v56 }
 0x9a8   :  { %v400_v60 = vsel %vm397_vm9, %v399_v57, %v395_v58 }
 0x9a9   :  { %v403_v61 = vsel %vm868_vm3, %v783_v59, %v400_v60 }
 0x9aa   :  { %406 = vrot.lane.b32.xlu0 %v403_v61, %s818_s2  ;;  %v404_v1 = vmul.f32 %v403_v61, %v355_v31 }
 0xa1c   :  { %v407_v62 = vpop.permute.xlu0 %406 }
 0xa1d   :  { %v409_v63 = vmul.f32 %v407_v62, %v403_v61 }
 0xa1f   :  { %411 = vrot.lane.b32.xlu1 %v409_v63, %s819_s16 }
 0xa27   :  { %63 = vperm.xlu1 %744, %v33_v0  }
 0xa91   :  { %v412_v2 = vpop.permute.xlu1 %411 }
 0xa92   :  { %v414_v3 = vadd.f32 %v412_v2, %v404_v1 }
 0xa94   :  { %784 = vtanh.f32 %v414_v3 }
 0xa99   :  { %v64_v14 = vpop.permute.xlu1 %63 }
 0xa9a   :  { %v785_v7 = vpop.eup %784  ;;  %v82_v16 = vmul.f32 %v857_v5, %v64_v14 }
 0xa9b   :  { %417 = vrot.lane.b32.xlu2 %v785_v7, %s818_s2 }
 0xaa3   :  { %106 = vperm.xlu2 %745, %v33_v0  }
 0xaf5   :  { %v418_v8 = vpop.permute.xlu2 %417 }
 0xaf6   :  { %v420_v10 = vmul.f32 %v418_v8, %v403_v61 }
 0xaf8   :  { %v421_v11 = vpack.c.bf16 %v420_v10, %v420_v10 }
 0xafa   :  { %423 = vrot.lane.b32.xlu0 %v421_v11, %s819_s16 }
 0xafd   :  { %v107_v13 = vpop.permute.xlu2 %106 }
 0xafe   :  { %v123_v15 = vmul.f32 %v860_v6, %v107_v13 }
 0xb00   :  { %v131_v17 = vadd.f32 %v123_v15, %v82_v16 }
 0xb02   :  { %v140_v18 = vadd.f32 %v864_v9, %v131_v17  ;;  %v35_v17 = vld [vmem:[%s1006_s0 + $0x38] sm:$0xff] }
 0xb6c   :  { %v424_v12 = vpop.permute.xlu0 %423 }
 0xb6d   :  { %728 = vmatmul.msk.bf16.vlgmr.msrb.gmra.mxu0 %vm184_vm7, %v424_v12 }
 0xbea   :  { %v437_v19 = vpop.f32.mrf.mxu0 }
 0xbeb   :  { %v441_v20 = vadd.f32 %v437_v19, %v140_v18 }
 0xbed   :  { %v442_v21 = vsub.f32 0.0, %v441_v20 }
 0xbef   :  { %v443_v22 = vmul.f32 1.442695, %v442_v21 }
 0xbf1   :  { %786 = vpow2.f32 %v443_v22 }
 0xbf2   :  { %v439_v23 = vpop.f32.mrf.mxu0 }
 0xbf7   :  { %v787_v24 = vpop.eup %786 }
 0xbf8   :  { %v445_v26 = vadd.f32 1.0, %v787_v24 }
 0xbfa   :  { %788 = vrcp.f32 %v445_v26  ;;  %v457_v30 = vand.u32 2147483648, %v445_v26  ;;  %v455_v32 = vand.u32 2147483647, %v445_v26  ;;  %vm451_vm11 = vweird.f32 %v445_v26 }
 0xbfb   :  { %790 = vtanh.f32 %v441_v20 }
 0xbfc   :  { %v458_v34 = vor.u32 1.1754944e-38, %v457_v30  ;;  %vm456_vm13 = vcmp.eq.f32.partialorder %v455_v32, 8.507059e+37 }
 0xc00   :  { %v789_v27 = vpop.eup %788 }
 0xc01   :  { %v447_v28 = vmul.f32 %v789_v27, %v445_v26  ;;  %vm452_vm10 = vweird.f32 %v789_v27  ;;  %v791_v36 = vpop.eup %790 }
 0xc02   :  { %vm453_vm12 = vmor %vm451_vm11, %vm452_vm10  ;;  %vm667_vm11 = vcmask 7168  }
 0xc03   :  { %v448_v29 = vsub.f32 1.0, %v447_v28 }
 0xc05   :  { %v449_v31 = vmul.f32 %v789_v27, %v448_v29 }
 0xc07   :  { %v450_v33 = vadd.f32 %v789_v27, %v449_v31 }
 0xc09   :  { %v454_v35 = vsel %vm453_vm12, %v789_v27, %v450_v33 }
 0xc0a   :  { %v459_v37 = vsel %vm456_vm13, %v458_v34, %v454_v35 }
 0xc0b   :  { %v462_v38 = vsel %vm868_vm3, %v791_v36, %v459_v37 }
 0xc0c   :  { %465 = vrot.lane.b32.xlu0 %v462_v38, %s818_s2  ;;  %v463_v42 = vmul.f32 %v462_v38, %v414_v3 }
 0xc7e   :  { %v466_v39 = vpop.permute.xlu0 %465 }
 0xc7f   :  { %v468_v40 = vmul.f32 %v466_v39, %v462_v38 }
 0xc81   :  { %470 = vrot.lane.b32.xlu1 %v468_v40, %s819_s16 }
 0xc89   :  { %68 = vperm.xlu1 %744, %v34_v41  }
 0xcf3   :  { %v471_v43 = vpop.permute.xlu1 %470 }
 0xcf4   :  { %v473_v44 = vadd.f32 %v471_v43, %v463_v42 }
 0xcf6   :  { %792 = vtanh.f32 %v473_v44 }
 0xcfb   :  { %v69_v51 = vpop.permute.xlu1 %68 }
 0xcfc   :  { %v793_v45 = vpop.eup %792  ;;  %v83_v53 = vmul.f32 %v857_v5, %v69_v51 }
 0xcfd   :  { %476 = vrot.lane.b32.xlu2 %v793_v45, %s818_s2 }
 0xd05   :  { %110 = vperm.xlu2 %745, %v34_v41  }
 0xd57   :  { %v477_v46 = vpop.permute.xlu2 %476 }
 0xd58   :  { %v479_v47 = vmul.f32 %v477_v46, %v462_v38 }
 0xd5a   :  { %v480_v48 = vpack.c.bf16 %v479_v47, %v479_v47 }
 0xd5c   :  { %482 = vrot.lane.b32.xlu0 %v480_v48, %s819_s16 }
 0xd5f   :  { %v111_v50 = vpop.permute.xlu2 %110 }
 0xd60   :  { %v124_v52 = vmul.f32 %v860_v6, %v111_v50 }
 0xd62   :  { %v132_v54 = vadd.f32 %v124_v52, %v83_v53 }
 0xd64   :  { %v141_v55 = vadd.f32 %v864_v9, %v132_v54 }
 0xdce   :  { %v483_v49 = vpop.permute.xlu0 %482 }
 0xdcf   :  { %729 = vmatmul.msk.bf16.vlgmr.msrb.gmra.mxu1 %vm184_vm7, %v483_v49 }
 0xe4c   :  { %v496_v56 = vpop.f32.mrf.mxu1 }
 0xe4d   :  { %v500_v57 = vadd.f32 %v496_v56, %v141_v55  ;;  %v22_v55 = vld [vmem:[%s1008_s1 + $0x30] sm:$0xff]  ;;  %v20_v56 = vld [vmem:[%s1008_s1 + $0x20] sm:$0xff] }
 0xe4f   :  { %v501_v58 = vsub.f32 0.0, %v500_v57 }
 0xe51   :  { %v502_v59 = vmul.f32 1.442695, %v501_v58  ;;  %v21_v58 = vld [vmem:[%s1008_s1 + $0x28] sm:$0xff]  ;;  %s822_s1 = smov 1  }
 0xe53   :  { %794 = vpow2.f32 %v502_v59  ;;  %v26_v59 = vpack.c.bf16 %v21_v58, %v20_v56 }
 0xe54   :  { %v498_v60 = vpop.f32.mrf.mxu1 }
 0xe59   :  { %v795_v61 = vpop.eup %794 }
 0xe5a   :  { %v504_v62 = vadd.f32 1.0, %v795_v61 }
 0xe5c   :  { %796 = vrcp.f32 %v504_v62  ;;  %v516_v2 = vand.u32 2147483648, %v504_v62  ;;  %v514_v7 = vand.u32 2147483647, %v504_v62  ;;  %vm510_vm15 = vweird.f32 %v504_v62 }
 0xe5d   :  { %798 = vtanh.f32 %v500_v57  ;;  %v27_v57 = vpack.c.bf16 %v23_v25, %v22_v55 }
 0xe5e   :  { %v517_v10 = vor.u32 1.1754944e-38, %v516_v2  ;;  %vm515_vm1 = vcmp.eq.f32.partialorder %v514_v7, 8.507059e+37 }
 0xe5f   :  { %612 = vmatpush.bf16.msrb.mxu3 %v27_v57 }
 0xe62   :  { %v797_v63 = vpop.eup %796 }
 0xe63   :  { %v506_v0 = vmul.f32 %v797_v63, %v504_v62  ;;  %vm511_vm14 = vweird.f32 %v797_v63  ;;  %v799_v12 = vpop.eup %798  ;;  %613 = vmatpush.bf16.msrb.mxu3 %v26_v59 }
 0xe64   :  { %vm512_vm0 = vmor %vm510_vm15, %vm511_vm14 }
 0xe65   :  { %v507_v1 = vsub.f32 1.0, %v506_v0  ;;  %v821_v0 = vmov 8.0  }
 0xe67   :  { %v508_v3 = vmul.f32 %v797_v63, %v507_v1 }
 0xe69   :  { %v509_v8 = vadd.f32 %v797_v63, %v508_v3  ;;  %v599_v3 = vperm.slane %v854_v4, 3 }
 0xe6b   :  { %v513_v11 = vsel %vm512_vm0, %v797_v63, %v509_v8 }
 0xe6c   :  { %v518_v13 = vsel %vm515_vm1, %v517_v10, %v513_v11 }
 0xe6d   :  { %v521_v14 = vsel %vm868_vm3, %v799_v12, %v518_v13 }
 0xe6e   :  { %524 = vrot.lane.b32.xlu0 %v521_v14, %s818_s2  ;;  %v522_v18 = vmul.f32 %v521_v14, %v473_v44 }
 0xee0   :  { %v525_v15 = vpop.permute.xlu0 %524 }
 0xee1   :  { %v527_v16 = vmul.f32 %v525_v15, %v521_v14 }
 0xee3   :  { %529 = vrot.lane.b32.xlu1 %v527_v16, %s819_s16 }
 0xeeb   :  { %73 = vperm.xlu1 %744, %v35_v17  }
 0xf55   :  { %v530_v19 = vpop.permute.xlu1 %529 }
 0xf56   :  { %v532_v20 = vadd.f32 %v530_v19, %v522_v18 }
 0xf58   :  { %800 = vtanh.f32 %v532_v20 }
 0xf5d   :  { %v74_v28 = vpop.permute.xlu1 %73 }
 0xf5e   :  { %v801_v21 = vpop.eup %800  ;;  %v84_v30 = vmul.f32 %v857_v5, %v74_v28 }
 0xf5f   :  { %535 = vrot.lane.b32.xlu2 %v801_v21, %s818_s2 }
 0xf67   :  { %114 = vperm.xlu2 %745, %v35_v17  }
 0xfb9   :  { %v536_v22 = vpop.permute.xlu2 %535 }
 0xfba   :  { %v538_v23 = vmul.f32 %v536_v22, %v521_v14 }
 0xfbc   :  { %v539_v24 = vpack.c.bf16 %v538_v23, %v538_v23 }
 0xfbe   :  { %541 = vrot.lane.b32.xlu0 %v539_v24, %s819_s16 }
 0xfc1   :  { %v115_v27 = vpop.permute.xlu2 %114 }
 0xfc2   :  { %v125_v29 = vmul.f32 %v860_v6, %v115_v27 }
 0xfc4   :  { %v133_v31 = vadd.f32 %v125_v29, %v84_v30 }
 0xfc6   :  { %v142_v32 = vadd.f32 %v864_v9, %v133_v31 }
0x1030   :  { %v542_v26 = vpop.permute.xlu0 %541 }
0x1031   :  { %730 = vmatmul.msk.bf16.vlgmr.msrb.gmra.mxu2 %vm184_vm7, %v542_v26 }
0x10b4   :  { %v555_v33 = vpop.f32.mrf.mxu2 }
0x10b5   :  { %v559_v34 = vadd.f32 %v555_v33, %v142_v32 }
0x10b7   :  { %v560_v35 = vsub.f32 0.0, %v559_v34 }
0x10b9   :  { %v561_v36 = vmul.f32 1.442695, %v560_v35 }
0x10bb   :  { %802 = vpow2.f32 %v561_v36 }
0x10bc   :  { %v557_v37 = vpop.f32.mrf.mxu2 }
0x10bd   :  { %v642_v37 = vperm.slane %v854_v4, 4 }
0x10c1   :  { %v803_v38 = vpop.eup %802 }
0x10c2   :  { %v563_v39 = vadd.f32 1.0, %v803_v38 }
0x10c4   :  { %804 = vrcp.f32 %v563_v39  ;;  %v575_v43 = vand.u32 2147483648, %v563_v39  ;;  %v573_v5 = vand.u32 2147483647, %v563_v39  ;;  %vm569_vm4 = vweird.f32 %v563_v39 }
0x10c5   :  { %806 = vtanh.f32 %v559_v34 }
0x10c6   :  { %v576_v9 = vor.u32 1.1754944e-38, %v575_v43  ;;  %vm574_vm6 = vcmp.eq.f32.partialorder %v573_v5, 8.507059e+37  ;;  %v661_v5 = vperm.slane %v854_v4, 6 }
0x10ca   :  { %v805_v40 = vpop.eup %804 }
0x10cb   :  { %v565_v41 = vmul.f32 %v805_v40, %v563_v39  ;;  %vm570_vm2 = vweird.f32 %v805_v40  ;;  %v807_v46 = vpop.eup %806 }
0x10cc   :  { %vm571_vm5 = vmor %vm569_vm4, %vm570_vm2 }
0x10cd   :  { %v566_v42 = vsub.f32 1.0, %v565_v41  ;;  %v656_v41 = vperm.slane %v854_v4, 5 }
0x10cf   :  { %v567_v6 = vmul.f32 %v805_v40, %v566_v42 }
0x10d1   :  { %v568_v44 = vadd.f32 %v805_v40, %v567_v6 }
0x10d3   :  { %v572_v45 = vsel %vm571_vm5, %v805_v40, %v568_v44 }
0x10d4   :  { %v577_v47 = vsel %vm574_vm6, %v576_v9, %v572_v45 }
0x10d5   :  { %v580_v48 = vsel %vm868_vm3, %v807_v46, %v577_v47  ;;  %v665_v46 = vperm.slane %v854_v4, 7 }
0x10d6   :  { %583 = vrot.lane.b32.xlu0 %v580_v48, %s818_s2  ;;  %v581_v51 = vmul.f32 %v580_v48, %v532_v20 }
0x1148   :  { %v584_v49 = vpop.permute.xlu0 %583 }
0x1149   :  { %v586_v50 = vmul.f32 %v584_v49, %v580_v48 }
0x114b   :  { %588 = vrot.lane.b32.xlu1 %v586_v50, %s819_s16 }
0x11bd   :  { %v589_v52 = vpop.permute.xlu1 %588 }
0x11be   :  { %v591_v53 = vadd.f32 %v589_v52, %v581_v51 }
0x11c0   :  { %808 = vtanh.f32 %v591_v53 }
0x11c1   :  { %810 = vrcp.f32 %v821_v0 }
0x11c6   :  { %v809_v54 = vpop.eup %808 }
0x11c7   :  { %594 = vrot.lane.b32.xlu2 %v809_v54, %s818_s2  ;;  %v811_v1 = vpop.eup %810  ;;  %s823_s2 = smov 127  }
0x11c8   :  { %v626_v2 = vmul.f32 8.0, %v811_v1  ;;  %vm630_vm3 = vweird.f32 %v811_v1 }
0x11ca   :  { %v627_v8 = vsub.f32 1.0, %v626_v2 }
0x11cc   :  { %v628_v12 = vmul.f32 %v811_v1, %v627_v8 }
0x11ce   :  { %v629_v15 = vadd.f32 %v811_v1, %v628_v12 }
0x11d0   :  { %v631_v19 = vsel %vm630_vm3, %v811_v1, %v629_v15 }
0x1221   :  { %v595_v60 = vpop.permute.xlu2 %594 }
0x1222   :  { %v597_v61 = vmul.f32 %v595_v60, %v580_v48 }
0x1224   :  { %v598_v62 = vpack.c.bf16 %v597_v61, %v597_v61 }
0x1226   :  { %601 = vrot.lane.b32.xlu0 %v598_v62, %s819_s16 }
0x1298   :  { %v602_v63 = vpop.permute.xlu0 %601 }
0x1299   :  { %731 = vmatmul.msk.bf16.vlgmr.msrb.gmra.mxu3 %vm184_vm7, %v602_v63 }
0x131c   :  { %v615_v7 = vpop.f32.mrf.mxu3 }
0x131d   :  { %v616_v10 = vadd.f32 %v615_v7, %v599_v3 }
0x131f   :  { %v619_v11 = vrot.slane %v616_v10, 4 }
0x1321   :  { %v620_v13 = vadd.f32 %v619_v11, %v616_v10 }
0x1323   :  { %v621_v14 = vrot.slane %v620_v13, 2 }
0x1324   :  { %v617_v16 = vpop.f32.mrf.mxu3 }
0x1325   :  { %v622_v17 = vadd.f32 %v621_v14, %v620_v13 }
0x1327   :  { %v623_v18 = vrot.slane %v622_v17, 1 }
0x1329   :  { %v624_v20 = vadd.f32 %v623_v18, %v622_v17 }
0x132b   :  { %v632_v21 = vmul.f32 %v631_v19, %v624_v20 }
0x132d   :  { %v633_v22 = vsub.f32 %v616_v10, %v632_v21 }
0x132f   :  { %v634_v23 = vmul.f32 %v633_v22, %v633_v22  ;;  %v643_v40 = vmul.f32 %v642_v37, %v633_v22 }
0x1331   :  { %v635_v24 = vrot.slane %v634_v23, 4 }
0x1333   :  { %v636_v26 = vadd.f32 %v635_v24, %v634_v23 }
0x1335   :  { %v637_v27 = vrot.slane %v636_v26, 2 }
0x1337   :  { %v638_v28 = vadd.f32 %v637_v27, %v636_v26 }
0x1339   :  { %v639_v29 = vrot.slane %v638_v28, 1 }
0x133b   :  { %v640_v30 = vadd.f32 %v639_v29, %v638_v28 }
0x133d   :  { %v641_v31 = vmul.f32 %v640_v30, %v631_v19 }
0x133f   :  { %v644_v32 = vadd.f32 1e-05, %v641_v31 }
0x1341   :  { %812 = vrsqrt.f32 %v644_v32  ;;  %vm651_vm8 = vweird.f32 %v644_v32 }
0x1347   :  { %v813_v33 = vpop.eup %812 }
0x1348   :  { %v646_v34 = vmul.f32 %v813_v33, %v644_v32  ;;  %vm652_vm7 = vweird.f32 %v813_v33 }
0x1349   :  { %vm653_vm9 = vmor %vm651_vm8, %vm652_vm7 }
0x134a   :  { %v647_v35 = vmul.f32 %v813_v33, %v646_v34 }
0x134c   :  { %v648_v36 = vmul.f32 0.5, %v647_v35 }
0x134e   :  { %v649_v38 = vsub.f32 1.5, %v648_v36 }
0x1350   :  { %v650_v39 = vmul.f32 %v813_v33, %v649_v38 }
0x1352   :  { %v654_v42 = vsel %vm653_vm9, %v813_v33, %v650_v39 }
0x1353   :  { %v655_v43 = vmul.f32 %v654_v42, %v643_v40 }
0x1355   :  { %v657_v6 = vadd.f32 %v656_v41, %v655_v43 }
0x1357   :  { %vm658_vm10 = vcmp.ge.f32.partialorder %v657_v6, 0.0  ;;  %v659_v44 = vmul.f32 0.01, %v657_v6 }
0x1359   :  { %v660_v9 = vsel %vm658_vm10, %v657_v6, %v659_v44 }
0x135a   :  { %v662_v45 = vmul.f32 %v661_v5, %v660_v9 }
0x135c   :  { %663 = vadd.xlane.f32.xlu1 %v662_v45 }
0x13cf   :  { %v664_v47 = vpop.xlane.xlu1 %663 }
0x13d0   :  { %v666_v48 = vadd.f32 %v665_v46, %v664_v47 }
0x13d2   :  { %v668_v49 = vsel %vm667_vm11, %v666_v48, 0.0 }
0x13d3   :  { %v669_v50 = vrot.slane %v668_v49, 4 }
0x13d5   :  { %v670_v51 = vadd.f32 %v669_v50, %v668_v49 }
0x13d7   :  { %v671_v52 = vrot.slane %v670_v51, 2 }
0x13d9   :  { %v672_v53 = vadd.f32 %v671_v52, %v670_v51 }
0x13db   :  { %v673_v54 = vrot.slane %v672_v53, 1 }
0x13dd   :  { %v674_v55 = vadd.f32 %v673_v54, %v672_v53 }
0x13df   :  { %v675_v25 = vmul.f32 %v674_v55, %v631_v19 }
0x13e1   :  { %v676_v56 = vsub.f32 %v666_v48, %v675_v25 }
0x13e3   :  { %v677_v57 = vmul.f32 %v676_v56, %v676_v56  ;;  %687 = vrot.lane.b32.xlu2 %v676_v56, %s822_s1 }
0x13e5   :  { %v678_v58 = vsel %vm667_vm11, %v677_v57, 0.0 }
0x13e6   :  { %v679_v59 = vrot.slane %v678_v58, 4 }
0x13e8   :  { %v680_v4 = vadd.f32 %v679_v59, %v678_v58 }
0x13ea   :  { %v681_v60 = vrot.slane %v680_v4, 2 }
0x13eb   :  { %708 = vrot.lane.b32.xlu2 %v665_v46, %s823_s2 }
0x13ec   :  { %v682_v61 = vadd.f32 %v681_v60, %v680_v4 }
0x13ee   :  { %v683_v62 = vrot.slane %v682_v61, 1 }
0x13f0   :  { %v684_v63 = vadd.f32 %v683_v62, %v682_v61 }
0x13f2   :  { %v685_v0 = vmul.f32 %v684_v63, %v631_v19 }
0x13f4   :  { %v691_v1 = vadd.f32 1e-05, %v685_v0 }
0x13f6   :  { %814 = vrsqrt.f32 %v691_v1  ;;  %vm698_vm13 = vweird.f32 %v691_v1 }
0x13fc   :  { %v815_v2 = vpop.eup %814 }
0x13fd   :  { %v693_v3 = vmul.f32 %v815_v2, %v691_v1  ;;  %vm699_vm12 = vweird.f32 %v815_v2 }
0x13fe   :  { %vm700_vm14 = vmor %vm698_vm13, %vm699_vm12 }
0x13ff   :  { %v694_v7 = vmul.f32 %v815_v2, %v693_v3 }
0x1401   :  { %v695_v8 = vmul.f32 0.5, %v694_v7 }
0x1403   :  { %v696_v10 = vsub.f32 1.5, %v695_v8 }
0x1405   :  { %v697_v11 = vmul.f32 %v815_v2, %v696_v10 }
0x1407   :  { %v701_v12 = vsel %vm700_vm14, %v815_v2, %v697_v11 }
0x1408   :  { %703 = vrot.lane.b32.xlu0 %v701_v12, %s822_s1 }
0x143d   :  { %v688_v13 = vpop.permute.xlu2 %687 }
0x143e   :  { %v690_v14 = vmul.f32 %v688_v13, %v665_v46 }
0x1445   :  { %v709_v16 = vpop.permute.xlu2 %708 }
0x147a   :  { %v704_v15 = vpop.permute.xlu0 %703 }
0x147b   :  { %v706_v17 = vmul.f32 %v704_v15, %v690_v14 }
0x147d   :  { %v711_v18 = vadd.f32 %v709_v16, %v706_v17 }
0x147f   :  { %v713_v19 = vmul.f32 0.01, %v711_v18  ;;  %vm712_vm15 = vcmp.ge.f32.partialorder %v711_v18, 0.0 }
0x1481   :  { %v714_v20 = vsel %vm712_vm15, %v711_v18, %v713_v19 }
0x1482   :  { %716 = vrot.lane.b32.xlu0 %v714_v20, %s823_s2 }
0x14f4   :  { %v717_v21 = vpop.permute.xlu0 %716 }
0x14f5   :  { %719 = vst.msk [vmem:[%s1009_s3] sm:$0xff] %vm667_vm11, %v717_v21 }

</bundles_post_ra>
